<compile_context>
chip_gen: v7x
topology: tpu7x:2x2x1
jax: 0.10.0
libtpu: 0.0.40
codegen_flags: <defaults>
</compile_context>

<pallas_src>
import functools

import jax
import jax.numpy as jnp
from jax.experimental import pallas as pl
from jax.experimental.pallas import tpu as pltpu


def _round_up(x: int, m: int) -> int:
    return ((x + m - 1) // m) * m


def _sublane(dtype) -> int:
    bits = jnp.dtype(dtype).itemsize * 8
    if bits >= 32:
        return 8
    if bits == 16:
        return 16
    return 32


def _gnet_kernel_direct(x_ref, w_ref, b_ref, o_ref):
    # x_ref: (tm, tk)   w_ref: (tk, tn)   b_ref: (1, tn)   o_ref: (tm, tn) f32
    # Output block index ignores k -> o_ref is resident across the K axis (accumulator).
    k = pl.program_id(2)

    @pl.when(k == 0)
    def _():
        o_ref[...] = jnp.broadcast_to(b_ref[...], o_ref.shape)

    o_ref[...] += jnp.dot(
        x_ref[...], w_ref[...], preferred_element_type=jnp.float32
    )


def _gnet_kernel_acc(x_ref, w_ref, b_ref, o_ref, acc_ref):
    # Variant with f32 scratch accumulator for non-f32 output dtypes.
    k = pl.program_id(2)

    @pl.when(k == 0)
    def _():
        acc_ref[...] = jnp.broadcast_to(b_ref[...], acc_ref.shape)

    acc_ref[...] += jnp.dot(
        x_ref[...], w_ref[...], preferred_element_type=jnp.float32
    )

    @pl.when(k == pl.num_programs(2) - 1)
    def _():
        o_ref[...] = acc_ref[...].astype(o_ref.dtype)


@functools.partial(jax.jit, static_argnames=("tm", "tn", "tk", "cast_bf16"))
def gnet_forward(x, weight, bias, *, tm=None, tn=None, tk=None, cast_bf16=False):
    """GNet forward: x (..., dim) -> (..., N) with weight (N, dim), bias (N,)."""
    *lead, K = x.shape
    N = weight.shape[0]
    M = 1
    for d in lead:
        M *= d
    M = max(M, 1)

    out_dtype = x.dtype
    compute_dtype = jnp.bfloat16 if cast_bf16 else x.dtype
    in_isz = jnp.dtype(compute_dtype).itemsize
    out_isz = jnp.dtype(out_dtype).itemsize
    sub = _sublane(compute_dtype)
    use_direct = out_dtype == jnp.float32

    # ---- tile sizes (lane dims multiples of 128, sublane dim dtype-aware) ----
    Np_full = _round_up(N, 128)
    if tn is None:
        # Skinny-N (typical GNet) case: keep the whole N panel resident so the
        # large activation tensor streams from HBM exactly once.
        tn = Np_full if Np_full <= 2048 else 512
    else:
        tn = _round_up(tn, 128)
    if tm is None:
        tm = min(512, _round_up(M, sub))
    else:
        tm = _round_up(tm, sub)
    if tk is None:
        tk = min(2048 if tn <= 512 else 1024, _round_up(K, 128))
    else:
        tk = _round_up(tk, 128)

    # ---- keep the pipelined footprint under a v7x-safe budget (~44 MiB) ----
    VMEM_BUDGET = 44 << 20

    def _footprint(tm_, tn_, tk_):
        f = 2 * (tm_ * tk_ + tk_ * tn_) * in_isz  # double-buffered x / W tiles
        f += 2 * tn_ * 4                          # bias
        f += 2 * tm_ * tn_ * out_isz              # output block
        if not use_direct:
            f += tm_ * tn_ * 4                    # scratch accumulator
        return f

    while _footprint(tm, tn, tk) > VMEM_BUDGET:
        if tk > 512:
            tk = max(128, _round_up(tk // 2, 128))
        elif tn > 512:
            tn = max(128, _round_up(tn // 2, 128))
        elif tm > sub:
            tm = max(sub, _round_up(tm // 2, sub))
        else:
            break

    Mp = _round_up(M, tm)
    Np = _round_up(N, tn)
    Kp = _round_up(K, tk)

    # ---- prepare operands (pad only when needed; zeros do not change the result) ----
    x2d = x.reshape(M, K).astype(compute_dtype)
    if (Mp, Kp) != (M, K):
        x2d = jnp.pad(x2d, ((0, Mp - M), (0, Kp - K)))

    # One-time transpose of the (small) weight to (K, N) — fused with cast/pad by XLA.
    w_t = weight.astype(compute_dtype).T
    if (Kp, Np) != (K, N):
        w_t = jnp.pad(w_t, ((0, Kp - K), (0, Np - N)))

    b2d = jnp.pad(bias.astype(jnp.float32), (0, Np - N)).reshape(1, Np)

    grid = (Mp // tm, Np // tn, Kp // tk)
    n_mb, n_nb, _ = grid

    cost = pl.CostEstimate(
        flops=2 * Mp * Np * Kp,
        bytes_accessed=int(
            Mp * Kp * in_isz * n_nb        # x panel read once per N block
            + Kp * Np * in_isz * n_mb      # W panel read once per M block
            + Np * 4 * n_mb * n_nb         # bias
            + Mp * Np * out_isz            # output written once
        ),
        transcendentals=0,
    )

    footprint = _footprint(tm, tn, tk)
    vmem_limit = int(min(max(footprint + (8 << 20), 16 << 20), 64 << 20))

    if use_direct:
        kernel = _gnet_kernel_direct
        scratch_shapes = []
    else:
        kernel = _gnet_kernel_acc
        scratch_shapes = [pltpu.VMEM((tm, tn), jnp.float32)]

    out2d = pl.pallas_call(
        kernel,
        out_shape=jax.ShapeDtypeStruct((Mp, Np), out_dtype),
        grid_spec=pltpu.PrefetchScalarGridSpec(
            num_scalar_prefetch=0,
            grid=grid,
            in_specs=[
                pl.BlockSpec((tm, tk), lambda i, j, k: (i, k)),  # x block
                pl.BlockSpec((tk, tn), lambda i, j, k: (k, j)),  # W block (K, N layout)
                pl.BlockSpec((1, tn), lambda i, j, k: (0, j)),   # bias block
            ],
            out_specs=pl.BlockSpec((tm, tn), lambda i, j, k: (i, j)),
            scratch_shapes=scratch_shapes,
        ),
        compiler_params=pltpu.CompilerParams(
            dimension_semantics=("parallel", "parallel", "arbitrary"),
            vmem_limit_bytes=vmem_limit,
        ),
        cost_estimate=cost,
    )(x2d, w_t, b2d)

    out2d = out2d[:M, :N]
    return out2d.reshape(*lead, N)


if __name__ == "__main__":
    # GNet(N, dim): linear from dim -> N, shapes consistent with the module.
    dim, N = 32, 16
    batch, seq = 2, 8

    key = jax.random.PRNGKey(0)
    kx, kw, kb = jax.random.split(key, 3)
    weight = jax.random.normal(kw, (N, dim), dtype=jnp.float32) * 0.1
    bias = jax.random.normal(kb, (N,), dtype=jnp.float32) * 0.1
    x = jax.random.normal(kx, (batch, seq, dim), dtype=jnp.float32)

    y = gnet_forward(x, weight, bias)
    y = jax.block_until_ready(y)

    y_ref = (
        jnp.matmul(x, weight.T, precision=jax.lax.Precision.HIGHEST) + bias
    )
    assert y.shape == (batch, seq, N)
    assert jnp.allclose(y, y_ref, atol=1e-4, rtol=1e-4)

    # Second check: ragged (M, K, N) with forced small tiles to exercise the
    # multi-block grid, K-accumulation across k>0 steps, and the padding/slice paths.
    M2, K2, N2 = 300, 560, 200
    kx2, kw2, kb2 = jax.random.split(jax.random.PRNGKey(1), 3)
    w2 = jax.random.normal(kw2, (N2, K2), dtype=jnp.float32) * 0.05
    b2 = jax.random.normal(kb2, (N2,), dtype=jnp.float32) * 0.05
    x2 = jax.random.normal(kx2, (M2, K2), dtype=jnp.float32)

    y2 = gnet_forward(x2, w2, b2, tm=128, tn=128, tk=256)
    y2 = jax.block_until_ready(y2)
    y2_ref = (
        jnp.matmul(x2, w2.T, precision=jax.lax.Precision.HIGHEST) + b2
    )
    assert y2.shape == (M2, N2)
    assert jnp.allclose(y2, y2_ref, atol=1e-4, rtol=1e-4)

    print("KERNEL_OK")
</pallas_src>

<mosaic_0001>
module attributes {stable_mosaic.version = 11 : i64} {
  func.func @_gnet_kernel_direct(%arg0: i32, %arg1: i32, %arg2: i32, %arg3: memref<16x128xf32, #tpu.memory_space<vmem>>, %arg4: memref<128x128xf32, #tpu.memory_space<vmem>>, %arg5: memref<1x128xf32, #tpu.memory_space<vmem>>, %arg6: memref<16x128xf32, #tpu.memory_space<vmem>>) attributes {dimension_semantics = [#tpu.dimension_semantics<parallel>, #tpu.dimension_semantics<parallel>, #tpu.dimension_semantics<arbitrary>], iteration_bounds = array<i64: 1, 1, 1>, scalar_prefetch = 0 : i64, scratch_operands = 0 : i64, tpu.core_type = #tpu.core_type<tc>, window_params = [{transform_indices = @transform_0, window_bounds = array<i64: 16, 128>}, {transform_indices = @transform_1, window_bounds = array<i64: 128, 128>}, {transform_indices = @transform_2, window_bounds = array<i64: 1, 128>}, {transform_indices = @transform_3, window_bounds = array<i64: 16, 128>}]} {
    %c0_i32 = arith.constant 0 : i32
    %0 = arith.cmpi eq, %arg2, %c0_i32 : i32
    %1 = arith.extui %0 : i1 to i32
    %c0_i32_0 = arith.constant 0 : i32
    %2 = arith.cmpi ne, %1, %c0_i32_0 : i32
    scf.if %2 {
      %c0_8 = arith.constant 0 : index
      %c0_9 = arith.constant 0 : index
      %9 = vector.load %arg5[%c0_8, %c0_9] : memref<1x128xf32, #tpu.memory_space<vmem>>, vector<1x128xf32>
      %10 = vector.shape_cast %9 : vector<1x128xf32> to vector<1x128xf32>
      %11 = vector.broadcast %10 : vector<1x128xf32> to vector<16x128xf32>
      %c0_10 = arith.constant 0 : index
      %c0_11 = arith.constant 0 : index
      %12 = vector.load %arg6[%c0_10, %c0_11] : memref<16x128xf32, #tpu.memory_space<vmem>>, vector<16x128xf32>
      tpu.vector_store %arg6[%c0_10, %c0_11], %11 {strides = array<i32>} : memref<16x128xf32, #tpu.memory_space<vmem>>, vector<16x128xf32>,
    } else {
    }
    %c0 = arith.constant 0 : index
    %c0_1 = arith.constant 0 : index
    %3 = vector.load %arg6[%c0, %c0_1] : memref<16x128xf32, #tpu.memory_space<vmem>>, vector<16x128xf32>
    %c0_2 = arith.constant 0 : index
    %c0_3 = arith.constant 0 : index
    %4 = vector.load %arg3[%c0_2, %c0_3] : memref<16x128xf32, #tpu.memory_space<vmem>>, vector<16x128xf32>
    %c0_4 = arith.constant 0 : index
    %c0_5 = arith.constant 0 : index
    %5 = vector.load %arg4[%c0_4, %c0_5] : memref<128x128xf32, #tpu.memory_space<vmem>>, vector<128x128xf32>
    %cst = arith.constant dense<0.000000e+00> : vector<16x128xf32>
    %6 = tpu.matmul %4, %5, %cst {dimension_numbers = #tpu.dot_dimension_numbers<[1], [0], [0], [1], [0, 0, 1, 1], [], []>} : vector<16x128xf32>, vector<128x128xf32>, vector<16x128xf32> -> vector<16x128xf32>
    %7 = arith.addf %3, %6 : vector<16x128xf32>
    %c0_6 = arith.constant 0 : index
    %c0_7 = arith.constant 0 : index
    %8 = vector.load %arg6[%c0_6, %c0_7] : memref<16x128xf32, #tpu.memory_space<vmem>>, vector<16x128xf32>
    tpu.vector_store %arg6[%c0_6, %c0_7], %7 {strides = array<i32>} : memref<16x128xf32, #tpu.memory_space<vmem>>, vector<16x128xf32>,
    return
  }
  func.func @transform_0(%arg0: i32, %arg1: i32, %arg2: i32) -> (i32, i32) {
    %c0_i32 = arith.constant 0 : i32
    return %arg0, %arg2 : i32, i32
  }
  func.func @transform_1(%arg0: i32, %arg1: i32, %arg2: i32) -> (i32, i32) {
    %c0_i32 = arith.constant 0 : i32
    return %arg2, %arg1 : i32, i32
  }
  func.func @transform_2(%arg0: i32, %arg1: i32, %arg2: i32) -> (i32, i32) {
    %c0_i32 = arith.constant 0 : i32
    %c0_i32_0 = arith.constant 0 : i32
    return %c0_i32, %arg1 : i32, i32
  }
  func.func @transform_3(%arg0: i32, %arg1: i32, %arg2: i32) -> (i32, i32) {
    %c0_i32 = arith.constant 0 : i32
    return %arg0, %arg1 : i32, i32
  }
}

</mosaic_0001>

<bundles_post_ra>
// kernel: gnet_forward.1
= control target key start
LH: loop header
LB: loop body
LE: loop exit
PB: predicated region body
PF: predicated region fallthrough
CT: control target
= control target key end

     0   :  { %s299_s1 = inlined_call_operand.vmem [shape: f32[128,128], index: 1, kind: input, shape index: {}]   ;;  %s300_s0 = inlined_call_operand.vmem [shape: f32[16,128], index: 0, kind: input, shape index: {}]   ;;  %s301_s2 = inlined_call_operand.vmem [shape: f32[1,128], index: 2, kind: input, shape index: {}]   ;;  %s302_s3 = inlined_call_operand.vmem [shape: f32[16,128], index: 3, kind: output, shape index: {}]  }
   0x1   :  { %v31_v0 = vld [vmem:[%s299_s1] sm:$0xff]  ;;  %v32_v1 = vld [vmem:[%s299_s1 + $0x8] sm:$0xff]  ;;  %v33_v2 = vld [vmem:[%s299_s1 + $0x10] sm:$0xff] }
   0x2   :  { %v184_v3 = vpack.c.bf16 %v32_v1, %v31_v0  ;;  %v34_v4 = vld [vmem:[%s299_s1 + $0x18] sm:$0xff]  ;;  %v35_v6 = vld [vmem:[%s299_s1 + $0x20] sm:$0xff]  ;;  %v36_v7 = vld [vmem:[%s299_s1 + $0x28] sm:$0xff] }
   0x3   :  { %v188_v5 = vpack.c.bf16 %v34_v4, %v33_v2  ;;  %v192_v8 = vpack.c.bf16 %v36_v7, %v35_v6  ;;  %v29_v9 = vld [vmem:[%s300_s0] sm:$0xff]  ;;  %v37_v10 = vld [vmem:[%s299_s1 + $0x30] sm:$0xff]  ;;  %v38_v11 = vld [vmem:[%s299_s1 + $0x38] sm:$0xff] }
   0x4   :  { %185 = vmatprep.subr.bf16.mxu0 %v184_v3  ;;  %181 = vmatprep.mubr.f32.mxu0 %v29_v9  ;;  %v196_v12 = vpack.c.bf16 %v38_v11, %v37_v10  ;;  %v39_v13 = vld [vmem:[%s299_s1 + $0x40] sm:$0xff]  ;;  %v40_v14 = vld [vmem:[%s299_s1 + $0x48] sm:$0xff]  ;;  %v41_v16 = vld [vmem:[%s299_s1 + $0x50] sm:$0xff] }
   0x5   :  { %187 = vmatpush3.bf16.msra.mxu0 %v184_v3  ;;  %v200_v15 = vpack.c.bf16 %v40_v14, %v39_v13  ;;  %v42_v17 = vld [vmem:[%s299_s1 + $0x58] sm:$0xff]  ;;  %v43_v19 = vld [vmem:[%s299_s1 + $0x60] sm:$0xff]  ;;  %v44_v20 = vld [vmem:[%s299_s1 + $0x68] sm:$0xff] }
   0x6   :  { %189 = vmatprep.subr.bf16.mxu0 %v188_v5  ;;  %v204_v18 = vpack.c.bf16 %v42_v17, %v41_v16  ;;  %v208_v21 = vpack.c.bf16 %v44_v20, %v43_v19  ;;  %v45_v22 = vld [vmem:[%s299_s1 + $0x70] sm:$0xff]  ;;  %v46_v23 = vld [vmem:[%s299_s1 + $0x78] sm:$0xff]  ;;  %v30_v25 = vld [vmem:[%s300_s0 + $0x8] sm:$0xff] }
   0x7   :  { %v212_v24 = vpack.c.bf16 %v46_v23, %v45_v22  ;;  %v130_v26 = vld [vmem:[%s301_s2] ss:$0 sm:$0xff] }
   0x9   :  { %191 = vmatpush3.bf16.msra.mxu0 %v188_v5 }
   0xa   :  { %193 = vmatprep.subr.bf16.mxu0 %v192_v8 }
   0xd   :  { %195 = vmatpush3.bf16.msra.mxu0 %v192_v8 }
   0xe   :  { %197 = vmatprep.subr.bf16.mxu0 %v196_v12 }
  0x11   :  { %199 = vmatpush3.bf16.msra.mxu0 %v196_v12 }
  0x12   :  { %201 = vmatprep.subr.bf16.mxu0 %v200_v15 }
  0x15   :  { %203 = vmatpush3.bf16.msra.mxu0 %v200_v15 }
  0x16   :  { %205 = vmatprep.subr.bf16.mxu0 %v204_v18 }
  0x19   :  { %207 = vmatpush3.bf16.msra.mxu0 %v204_v18 }
  0x1a   :  { %209 = vmatprep.subr.bf16.mxu0 %v208_v21 }
  0x1d   :  { %211 = vmatpush3.bf16.msra.mxu0 %v208_v21 }
  0x1e   :  { %213 = vmatprep.subr.bf16.mxu0 %v212_v24 }
  0x21   :  { %215 = vmatpush3.bf16.msra.mxu0 %v212_v24 }
  0x24   :  { %182 = vmatmul.mubr.f32.vlgmr.msra.gmra.mrb[0].mxu0 %v30_v25 }
  0xf7   :  { %v183_v27 = vpop.f32.mrb[0].mxu0 }
  0xf8   :  { %v123_v28 = vadd.f32 %v183_v27, %v130_v26  ;;  %v113_v29 = vpop.f32.mrb[1].mxu0 }
  0xf9   :  { %v122_v30 = vadd.f32 %v130_v26, %v113_v29 }
  0xfa   :  { %125 = vst [vmem:[%s302_s3 + $0x8] sm:$0xff] %v123_v28 }
  0xfb   :  { %124 = vst [vmem:[%s302_s3] sm:$0xff] %v122_v30 }

</bundles_post_ra>
